<compile_context>
chip_gen: v6e
topology: v6e:2x2x1
jax: 0.10.0
libtpu: 0.0.40
codegen_flags: <defaults>
</compile_context>

<pallas_src>
import jax
import jax.numpy as jnp
from jax.experimental import pallas as pl
from jax.experimental.pallas import tpu as pltpu


def _round_up(x, m):
    return ((x + m - 1) // m) * m


def _dueling_kernel(x_ref, w1_ref, b1_ref, w2_ref, b2_ref, wq_ref, bq_ref,
                    out_ref):
    """One batch tile of the fused dueling-DQN forward.

    x_ref : [tb, S]   f32 state tile (cast to compute dtype in-kernel)
    w1_ref: [S, F1]   b1_ref: [1, F1]  (bias f32)
    w2_ref: [F1, F2]  b2_ref: [1, F2]
    wq_ref: [F2, A]   folded dueling head:  wa - mean_a(wa) + wv
    bq_ref: [1, A]    folded head bias (f32)
    out_ref:[tb, A]   Q values, f32
    """
    cdt = w1_ref.dtype                      # compute dtype (bf16 or f32)
    x = x_ref[...].astype(cdt)              # in-kernel cast: no extra XLA pass

    # fc1 + ReLU (f32 MXU accumulation)
    h1 = jnp.dot(x, w1_ref[...], preferred_element_type=jnp.float32) + b1_ref[...]
    h1 = jnp.maximum(h1, 0.0).astype(cdt)   # [tb, F1]

    # fc2 + ReLU
    h2 = jnp.dot(h1, w2_ref[...], preferred_element_type=jnp.float32) + b2_ref[...]
    h2 = jnp.maximum(h2, 0.0).astype(cdt)   # [tb, F2]

    # folded dueling head: single matmul + bias == V + (A - mean(A))
    q = jnp.dot(h2, wq_ref[...], preferred_element_type=jnp.float32) + bq_ref[...]
    out_ref[...] = q.astype(out_ref.dtype)  # [tb, A]


def prepare_params(params, compute_dtype=jnp.bfloat16):
    """Fold the dueling combine into the head and cast weights.

    Call once per parameter update (not per forward).  The fold is exact:
      q_k = v + a_k - mean_j a_j
          = x @ (wa[:,k] - mean_j wa[:,j] + wv) + (ba_k - mean_j ba_j + bv)
    """
    w1, b1, w2, b2, wv, bv, wa, ba = params
    wa = wa.astype(jnp.float32)
    wv = wv.astype(jnp.float32)
    ba = ba.astype(jnp.float32)
    bv = bv.astype(jnp.float32)

    wq = wa - wa.mean(axis=1, keepdims=True) + wv      # [F2, A]
    bq = ba - ba.mean(axis=1, keepdims=True) + bv      # [1, A]

    return (w1.astype(compute_dtype), b1.astype(jnp.float32),
            w2.astype(compute_dtype), b2.astype(jnp.float32),
            wq.astype(compute_dtype), bq.astype(jnp.float32))


def dueling_qnetwork_forward(state, prepared, *, block_b=None, block_b_cap=2048):
    """state: [B, state_size] f32; prepared: output of prepare_params.

    Returns Q-values [B, action_size] f32.
    block_b_cap: largest batch tile.  Keep it large on single-TC chips
    (v5e/v6e); on v7x, batches larger than the cap automatically give >=2
    "parallel" grid steps so both TensorCores are used.
    """
    w1, b1, w2, b2, wq, bq = prepared
    B, S = state.shape
    F1 = w1.shape[1]
    F2 = w2.shape[1]
    A = wq.shape[1]

    # 128-aligned batch tile (lane/sublane friendly); ragged last block is
    # masked by Pallas -- no wrapper-side padding.
    if block_b is None:
        block_b = min(block_b_cap, _round_up(B, 128))
    block_b = max(128, _round_up(block_b, 128))

    grid = (pl.cdiv(B, block_b),)
    rep = lambda i: (0, 0)   # weights/biases replicated across batch tiles

    cdt_isz = jnp.dtype(w1.dtype).itemsize
    cost = pl.CostEstimate(
        flops=2 * B * (S * F1 + F1 * F2 + F2 * A),
        transcendentals=0,
        bytes_accessed=(B * S * jnp.dtype(state.dtype).itemsize
                        + (S * F1 + F1 * F2 + F2 * A) * cdt_isz
                        + (F1 + F2 + A) * 4
                        + B * A * 4))

    return pl.pallas_call(
        _dueling_kernel,
        out_shape=jax.ShapeDtypeStruct((B, A), jnp.float32),
        grid_spec=pltpu.PrefetchScalarGridSpec(
            num_scalar_prefetch=0,
            grid=grid,
            in_specs=[
                pl.BlockSpec((block_b, S), lambda i: (i, 0)),   # state tile
                pl.BlockSpec((S, F1), rep),                     # fc1 weight
                pl.BlockSpec((1, F1), rep),                     # fc1 bias
                pl.BlockSpec((F1, F2), rep),                    # fc2 weight
                pl.BlockSpec((1, F2), rep),                     # fc2 bias
                pl.BlockSpec((F2, A), rep),                     # folded head weight
                pl.BlockSpec((1, A), rep),                      # folded head bias
            ],
            out_specs=pl.BlockSpec((block_b, A), lambda i: (i, 0)),
        ),
        compiler_params=pltpu.CompilerParams(
            dimension_semantics=("parallel",)),
        cost_estimate=cost,
    )(state, w1, b1, w2, b2, wq, bq)


def init_params(key, state_size, action_size, fc1_units=64, fc2_units=128):
    """Deterministic init mimicking PyTorch Linear default (U[-1/sqrt(fan_in), +])."""
    def linear(k, fan_in, fan_out):
        kw, kb = jax.random.split(k)
        bound = 1.0 / jnp.sqrt(fan_in)
        w = jax.random.uniform(kw, (fan_in, fan_out), jnp.float32, -bound, bound)
        b = jax.random.uniform(kb, (1, fan_out), jnp.float32, -bound, bound)
        return w, b

    k1, k2, k3, k4 = jax.random.split(key, 4)
    w1, b1 = linear(k1, state_size, fc1_units)
    w2, b2 = linear(k2, fc1_units, fc2_units)
    wv, bv = linear(k3, fc2_units, 1)
    wa, ba = linear(k4, fc2_units, action_size)
    return (w1, b1, w2, b2, wv, bv, wa, ba)


def reference_forward(state, params):
    """Pure-JAX reference matching the PyTorch module semantics (f32)."""
    w1, b1, w2, b2, wv, bv, wa, ba = params
    x = jnp.maximum(jnp.dot(state, w1, preferred_element_type=jnp.float32) + b1, 0.0)
    x = jnp.maximum(jnp.dot(x, w2, preferred_element_type=jnp.float32) + b2, 0.0)
    v = jnp.dot(x, wv, preferred_element_type=jnp.float32) + bv
    a = jnp.dot(x, wa, preferred_element_type=jnp.float32) + ba
    return v + (a - a.mean(axis=1, keepdims=True))


if __name__ == "__main__":
    # small shapes consistent with the module: batch=8, state_size=16, actions=4
    B, S, A = 8, 16, 4
    key = jax.random.PRNGKey(0)
    k_state, k_params = jax.random.split(key)

    state = jax.random.normal(k_state, (B, S), dtype=jnp.float32)
    params = init_params(k_params, state_size=S, action_size=A)
    q_ref = reference_forward(state, params)

    # f32 compute path (correctness/test path only -- don't benchmark): tight check
    prep_f32 = prepare_params(params, compute_dtype=jnp.float32)
    q_f32 = jax.block_until_ready(dueling_qnetwork_forward(state, prep_f32))
    assert q_f32.shape == (B, A)
    assert jnp.allclose(q_f32, q_ref, atol=1e-4, rtol=1e-4), "f32 mismatch vs reference"

    # default bf16 compute path (f32 MXU accumulation): loose check
    prep_bf16 = prepare_params(params)
    q_bf16 = jax.block_until_ready(dueling_qnetwork_forward(state, prep_bf16))
    assert q_bf16.shape == (B, A)
    assert jnp.allclose(q_bf16, q_ref, atol=5e-2, rtol=5e-2), "bf16 mismatch vs reference"

    # ragged batch exercised through the masked (non-divisible) path
    state_odd = jax.random.normal(k_state, (B + 3, S), dtype=jnp.float32)
    q_odd = jax.block_until_ready(dueling_qnetwork_forward(state_odd, prep_f32))
    assert q_odd.shape == (B + 3, A)
    assert jnp.allclose(q_odd, reference_forward(state_odd, params),
                        atol=1e-4, rtol=1e-4), "odd-batch mismatch vs reference"

    # multi-step grid (parallel axis) with a ragged last block: B=200, block_b=128
    state_big = jax.random.normal(k_state, (200, S), dtype=jnp.float32)
    q_big = jax.block_until_ready(
        dueling_qnetwork_forward(state_big, prep_f32, block_b=128))
    assert q_big.shape == (200, A)
    assert jnp.allclose(q_big, reference_forward(state_big, params),
                        atol=1e-4, rtol=1e-4), "multi-tile mismatch vs reference"

    print("KERNEL_OK")
</pallas_src>

<mosaic_0001>
module attributes {stable_mosaic.version = 11 : i64} {
  func.func @_dueling_kernel(%arg0: i32, %arg1: memref<128x16xf32, #tpu.memory_space<vmem>>, %arg2: memref<16x64xf32, #tpu.memory_space<vmem>>, %arg3: memref<1x64xf32, #tpu.memory_space<vmem>>, %arg4: memref<64x128xf32, #tpu.memory_space<vmem>>, %arg5: memref<1x128xf32, #tpu.memory_space<vmem>>, %arg6: memref<128x4xf32, #tpu.memory_space<vmem>>, %arg7: memref<1x4xf32, #tpu.memory_space<vmem>>, %arg8: memref<128x4xf32, #tpu.memory_space<vmem>>) attributes {dimension_semantics = [#tpu.dimension_semantics<parallel>], iteration_bounds = array<i64: 1>, scalar_prefetch = 0 : i64, scratch_operands = 0 : i64, tpu.core_type = #tpu.core_type<tc>, window_params = [{transform_indices = @transform_0, window_bounds = array<i64: 128, 16>}, {pipeline_mode = #tpu.pipeline_mode<synchronous>, transform_indices = @transform_1, window_bounds = array<i64: 16, 64>}, {pipeline_mode = #tpu.pipeline_mode<synchronous>, transform_indices = @transform_2, window_bounds = array<i64: 1, 64>}, {pipeline_mode = #tpu.pipeline_mode<synchronous>, transform_indices = @transform_3, window_bounds = array<i64: 64, 128>}, {pipeline_mode = #tpu.pipeline_mode<synchronous>, transform_indices = @transform_4, window_bounds = array<i64: 1, 128>}, {pipeline_mode = #tpu.pipeline_mode<synchronous>, transform_indices = @transform_5, window_bounds = array<i64: 128, 4>}, {pipeline_mode = #tpu.pipeline_mode<synchronous>, transform_indices = @transform_6, window_bounds = array<i64: 1, 4>}, {transform_indices = @transform_7, window_bounds = array<i64: 128, 4>}]} {
    %c0 = arith.constant 0 : index
    %c0_0 = arith.constant 0 : index
    %0 = vector.load %arg1[%c0, %c0_0] : memref<128x16xf32, #tpu.memory_space<vmem>>, vector<128x16xf32>
    %c0_1 = arith.constant 0 : index
    %c0_2 = arith.constant 0 : index
    %1 = vector.load %arg2[%c0_1, %c0_2] : memref<16x64xf32, #tpu.memory_space<vmem>>, vector<16x64xf32>
    %cst = arith.constant dense<0.000000e+00> : vector<128x64xf32>
    %2 = tpu.matmul %0, %1, %cst {dimension_numbers = #tpu.dot_dimension_numbers<[1], [0], [0], [1], [0, 0, 1, 1], [], []>} : vector<128x16xf32>, vector<16x64xf32>, vector<128x64xf32> -> vector<128x64xf32>
    %c0_3 = arith.constant 0 : index
    %c0_4 = arith.constant 0 : index
    %3 = vector.load %arg3[%c0_3, %c0_4] : memref<1x64xf32, #tpu.memory_space<vmem>>, vector<1x64xf32>
    %4 = vector.broadcast %3 : vector<1x64xf32> to vector<128x64xf32>
    %5 = arith.addf %2, %4 : vector<128x64xf32>
    %cst_5 = arith.constant 0.000000e+00 : f32
    %6 = vector.broadcast %cst_5 : f32 to vector<128x64xf32>
    %7 = arith.maximumf %5, %6 : vector<128x64xf32>
    %c0_6 = arith.constant 0 : index
    %c0_7 = arith.constant 0 : index
    %8 = vector.load %arg4[%c0_6, %c0_7] : memref<64x128xf32, #tpu.memory_space<vmem>>, vector<64x128xf32>
    %cst_8 = arith.constant dense<0.000000e+00> : vector<128x128xf32>
    %9 = tpu.matmul %7, %8, %cst_8 {dimension_numbers = #tpu.dot_dimension_numbers<[1], [0], [0], [1], [0, 0, 1, 1], [], []>} : vector<128x64xf32>, vector<64x128xf32>, vector<128x128xf32> -> vector<128x128xf32>
    %c0_9 = arith.constant 0 : index
    %c0_10 = arith.constant 0 : index
    %10 = vector.load %arg5[%c0_9, %c0_10] : memref<1x128xf32, #tpu.memory_space<vmem>>, vector<1x128xf32>
    %11 = vector.broadcast %10 : vector<1x128xf32> to vector<128x128xf32>
    %12 = arith.addf %9, %11 : vector<128x128xf32>
    %cst_11 = arith.constant 0.000000e+00 : f32
    %13 = vector.broadcast %cst_11 : f32 to vector<128x128xf32>
    %14 = arith.maximumf %12, %13 : vector<128x128xf32>
    %c0_12 = arith.constant 0 : index
    %c0_13 = arith.constant 0 : index
    %15 = vector.load %arg6[%c0_12, %c0_13] : memref<128x4xf32, #tpu.memory_space<vmem>>, vector<128x4xf32>
    %cst_14 = arith.constant dense<0.000000e+00> : vector<128x4xf32>
    %16 = tpu.matmul %14, %15, %cst_14 {dimension_numbers = #tpu.dot_dimension_numbers<[1], [0], [0], [1], [0, 0, 1, 1], [], []>} : vector<128x128xf32>, vector<128x4xf32>, vector<128x4xf32> -> vector<128x4xf32>
    %c0_15 = arith.constant 0 : index
    %c0_16 = arith.constant 0 : index
    %17 = vector.load %arg7[%c0_15, %c0_16] : memref<1x4xf32, #tpu.memory_space<vmem>>, vector<1x4xf32>
    %18 = vector.broadcast %17 : vector<1x4xf32> to vector<128x4xf32>
    %19 = arith.addf %16, %18 : vector<128x4xf32>
    %c0_17 = arith.constant 0 : index
    %c0_18 = arith.constant 0 : index
    %20 = vector.load %arg8[%c0_17, %c0_18] : memref<128x4xf32, #tpu.memory_space<vmem>>, vector<128x4xf32>
    tpu.vector_store %arg8[%c0_17, %c0_18], %19 {strides = array<i32>} : memref<128x4xf32, #tpu.memory_space<vmem>>, vector<128x4xf32>,
    return
  }
  func.func @transform_0(%arg0: i32) -> (i32, i32) {
    %c0_i32 = arith.constant 0 : i32
    %c0_i32_0 = arith.constant 0 : i32
    return %arg0, %c0_i32 : i32, i32
  }
  func.func @transform_1(%arg0: i32) -> (i32, i32) {
    %c0_i32 = arith.constant 0 : i32
    %c0_i32_0 = arith.constant 0 : i32
    %c0_i32_1 = arith.constant 0 : i32
    return %c0_i32, %c0_i32_0 : i32, i32
  }
  func.func @transform_2(%arg0: i32) -> (i32, i32) {
    %c0_i32 = arith.constant 0 : i32
    %c0_i32_0 = arith.constant 0 : i32
    %c0_i32_1 = arith.constant 0 : i32
    return %c0_i32, %c0_i32_0 : i32, i32
  }
  func.func @transform_3(%arg0: i32) -> (i32, i32) {
    %c0_i32 = arith.constant 0 : i32
    %c0_i32_0 = arith.constant 0 : i32
    %c0_i32_1 = arith.constant 0 : i32
    return %c0_i32, %c0_i32_0 : i32, i32
  }
  func.func @transform_4(%arg0: i32) -> (i32, i32) {
    %c0_i32 = arith.constant 0 : i32
    %c0_i32_0 = arith.constant 0 : i32
    %c0_i32_1 = arith.constant 0 : i32
    return %c0_i32, %c0_i32_0 : i32, i32
  }
  func.func @transform_5(%arg0: i32) -> (i32, i32) {
    %c0_i32 = arith.constant 0 : i32
    %c0_i32_0 = arith.constant 0 : i32
    %c0_i32_1 = arith.constant 0 : i32
    return %c0_i32, %c0_i32_0 : i32, i32
  }
  func.func @transform_6(%arg0: i32) -> (i32, i32) {
    %c0_i32 = arith.constant 0 : i32
    %c0_i32_0 = arith.constant 0 : i32
    %c0_i32_1 = arith.constant 0 : i32
    return %c0_i32, %c0_i32_0 : i32, i32
  }
  func.func @transform_7(%arg0: i32) -> (i32, i32) {
    %c0_i32 = arith.constant 0 : i32
    %c0_i32_0 = arith.constant 0 : i32
    return %arg0, %c0_i32 : i32, i32
  }
}

</mosaic_0001>

<bundles_post_ra>
// kernel: tpu_custom_call.1
= control target key start
LH: loop header
LB: loop body
LE: loop exit
PB: predicated region body
PF: predicated region fallthrough
CT: control target
= control target key end

     0   :  { %vm51_vm0 = vcmask 130048   ;;  %vm276_vm1 = vcmask 523264   ;;  %vm654_vm2 = vcmask 31744   ;;  %s1259_s0 = inlined_call_operand.vmem [shape: f32[8,16], index: 0, kind: input, shape index: {}]   ;;  %s1260_s1 = inlined_call_operand.vmem [shape: f32[16,64], index: 1, kind: input, shape index: {}]   ;;  %s1261_s2 = inlined_call_operand.vmem [shape: f32[1,64], index: 2, kind: input, shape index: {}]   ;;  %s1262_s3 = inlined_call_operand.vmem [shape: f32[64,128], index: 3, kind: input, shape index: {}]   ;;  %s1263_s4 = inlined_call_operand.vmem [shape: f32[1,128], index: 4, kind: input, shape index: {}]   ;;  %s1264_s5 = inlined_call_operand.vmem [shape: f32[128,4], index: 5, kind: input, shape index: {}]   ;;  %s1265_s6 = inlined_call_operand.vmem [shape: f32[1,4], index: 6, kind: input, shape index: {}]   ;;  %s1266_s7 = inlined_call_operand.vmem [shape: f32[8,4], index: 7, kind: output, shape index: {}]  }
   0x1   :  { %v43_v0 = vld [vmem:[%s1260_s1 + $0x8] sm:$0xff]  ;;  %v42_v1 = vld [vmem:[%s1260_s1] sm:$0xff]  ;;  %v28_v4 = vld [vmem:[%s1259_s0 + $0x10] sm:$0xff] }
   0x2   :  { %v26_v2 = vld [vmem:[%s1259_s0] sm:$0xff]  ;;  %821 = vmatprep.subr.mxu0 %v43_v0  ;;  %v27_v3 = vld [vmem:[%s1259_s0 + $0x8] sm:$0xff]  ;;  %v29_v5 = vld [vmem:[%s1259_s0 + $0x18] sm:$0xff] }
   0x3   :  { %825 = vmatprep.mubr.msk.f32.mxu0 %vm51_vm0, %v26_v2  ;;  %822 = vmatpush3.msra.mxu0 %v43_v0  ;;  %v268_v6 = vld [vmem:[%s1262_s3 + $0x38] sm:$0xff]  ;;  %v267_v7 = vld [vmem:[%s1262_s3 + $0x30] sm:$0xff]  ;;  %v30_v8 = vld [vmem:[%s1259_s0 + $0x20] sm:$0xff] }
   0x4   :  { %823 = vmatprep.subr.mxu0 %v42_v1  ;;  %849 = vmatprep.subr.mxu1 %v268_v6  ;;  %v266_v9 = vld [vmem:[%s1262_s3 + $0x28] sm:$0xff]  ;;  %v265_v11 = vld [vmem:[%s1262_s3 + $0x20] sm:$0xff]  ;;  %v32_v12 = vld [vmem:[%s1259_s0 + $0x30] sm:$0xff] }
   0x5   :  { %824 = vmatpush3.msra.mxu0 %v42_v1  ;;  %850 = vmatpush3.msra.mxu1 %v268_v6  ;;  %v31_v10 = vld [vmem:[%s1259_s0 + $0x28] sm:$0xff]  ;;  %v33_v13 = vld [vmem:[%s1259_s0 + $0x38] sm:$0xff]  ;;  %v34_v14 = vld [vmem:[%s1259_s0 + $0x40] sm:$0xff] }
   0x6   :  { %826 = vmatmul.mubr.msk.f32.vlgmr.msra.gmra.mxu0 %vm51_vm0, %v27_v3  ;;  %851 = vmatprep.subr.mxu1 %v267_v7  ;;  %v35_v15 = vld [vmem:[%s1259_s0 + $0x48] sm:$0xff]  ;;  %v36_v16 = vld [vmem:[%s1259_s0 + $0x50] sm:$0xff]  ;;  %v37_v17 = vld [vmem:[%s1259_s0 + $0x58] sm:$0xff] }
   0x7   :  { %828 = vmatprep.mubr.msk.f32.mxu0 %vm51_vm0, %v28_v4  ;;  %852 = vmatpush3.msra.mxu1 %v267_v7  ;;  %v38_v18 = vld [vmem:[%s1259_s0 + $0x60] sm:$0xff]  ;;  %v39_v19 = vld [vmem:[%s1259_s0 + $0x68] sm:$0xff]  ;;  %v40_v20 = vld [vmem:[%s1259_s0 + $0x70] sm:$0xff] }
   0x8   :  { %853 = vmatprep.subr.mxu1 %v266_v9  ;;  %v41_v21 = vld [vmem:[%s1259_s0 + $0x78] sm:$0xff]  ;;  %v263_v23 = vld [vmem:[%s1262_s3 + $0x10] sm:$0xff]  ;;  %v262_v24 = vld [vmem:[%s1262_s3 + $0x8] sm:$0xff] }
   0x9   :  { %854 = vmatpush3.msra.mxu1 %v266_v9  ;;  %v264_v22 = vld [vmem:[%s1262_s3 + $0x18] sm:$0xff]  ;;  %v261_v25 = vld [vmem:[%s1262_s3] sm:$0xff]  ;;  %v500_v27 = vld [vmem:[%s1264_s5 + $0x70] sm:$0xff] }
   0xa   :  { %829 = vmatmul.mubr.msk.f32.gmra.mxu0 %vm51_vm0, %v29_v5  ;;  %855 = vmatprep.subr.mxu1 %v265_v11  ;;  %v501_v26 = vld [vmem:[%s1264_s5 + $0x78] sm:$0xff]  ;;  %v499_v28 = vld [vmem:[%s1264_s5 + $0x68] sm:$0xff]  ;;  %v1123_v29 = vld [vmem:[%s1264_s5 + $0x60] sm:$0xff] }
   0xb   :  { %831 = vmatprep.mubr.msk.f32.mxu0 %vm51_vm0, %v30_v8  ;;  %856 = vmatpush3.msra.mxu1 %v265_v11  ;;  %v1128_v30 = vld [vmem:[%s1264_s5 + $0x58] sm:$0xff]  ;;  %v1135_v31 = vld [vmem:[%s1264_s5 + $0x50] sm:$0xff]  ;;  %v1142_v32 = vld [vmem:[%s1264_s5 + $0x48] sm:$0xff] }
   0xc   :  { %857 = vmatprep.subr.mxu1 %v264_v22  ;;  %889 = vmatprep.subr.mxu0 %v501_v26  ;;  %v1149_v33 = vld [vmem:[%s1264_s5 + $0x40] sm:$0xff]  ;;  %v1156_v34 = vld [vmem:[%s1264_s5 + $0x38] sm:$0xff]  ;;  %v1163_v35 = vld [vmem:[%s1264_s5 + $0x30] sm:$0xff] }
   0xd   :  { %858 = vmatpush3.msra.mxu1 %v264_v22  ;;  %890 = vmatpush3.msra.mxu0 %v501_v26  ;;  %v1170_v36 = vld [vmem:[%s1264_s5 + $0x28] sm:$0xff]  ;;  %v1177_v37 = vld [vmem:[%s1264_s5 + $0x20] sm:$0xff] }
   0xe   :  { %832 = vmatmul.mubr.msk.f32.gmra.mxu0 %vm51_vm0, %v31_v10  ;;  %859 = vmatprep.subr.mxu1 %v263_v23  ;;  %v1186_v38 = vld [vmem:[%s1261_s2] ss:$0 sm:$0xff] }
   0xf   :  { %834 = vmatprep.mubr.msk.f32.mxu0 %vm51_vm0, %v32_v12  ;;  %860 = vmatpush3.msra.mxu1 %v263_v23  ;;  %v489_v23 = vld [vmem:[%s1264_s5 + $0x18] sm:$0xff] }
  0x10   :  { %861 = vmatprep.subr.mxu1 %v262_v24  ;;  %891 = vmatprep.subr.mxu0 %v500_v27 }
  0x11   :  { %862 = vmatpush3.msra.mxu1 %v262_v24  ;;  %892 = vmatpush3.msra.mxu0 %v500_v27  ;;  %v488_v24 = vld [vmem:[%s1264_s5 + $0x10] sm:$0xff] }
  0x12   :  { %835 = vmatmul.mubr.msk.f32.gmra.mxu0 %vm51_vm0, %v33_v13  ;;  %863 = vmatprep.subr.mxu1 %v261_v25 }
  0x13   :  { %837 = vmatprep.mubr.msk.f32.mxu0 %vm51_vm0, %v34_v14  ;;  %864 = vmatpush3.msra.mxu1 %v261_v25  ;;  %v487_v25 = vld [vmem:[%s1264_s5 + $0x8] sm:$0xff] }
  0x14   :  { %945 = vmatprep.subr.mxu1 %v501_v26  ;;  %893 = vmatprep.subr.mxu0 %v499_v28 }
  0x15   :  { %894 = vmatpush3.msra.mxu0 %v499_v28 }
  0x16   :  { %838 = vmatmul.mubr.msk.f32.gmra.mxu0 %vm51_vm0, %v35_v15  ;;  %895 = vmatprep.subr.mxu0 %v1123_v29 }
  0x17   :  { %840 = vmatprep.mubr.msk.f32.mxu0 %vm51_vm0, %v36_v16  ;;  %896 = vmatpush3.msra.mxu0 %v1123_v29 }
  0x18   :  { %897 = vmatprep.subr.mxu0 %v1128_v30 }
  0x19   :  { %898 = vmatpush3.msra.mxu0 %v1128_v30 }
  0x1a   :  { %841 = vmatmul.mubr.msk.f32.gmra.mxu0 %vm51_vm0, %v37_v17  ;;  %899 = vmatprep.subr.mxu0 %v1135_v31 }
  0x1b   :  { %843 = vmatprep.mubr.msk.f32.mxu0 %vm51_vm0, %v38_v18  ;;  %900 = vmatpush3.msra.mxu0 %v1135_v31 }
  0x1c   :  { %901 = vmatprep.subr.mxu0 %v1142_v32 }
  0x1d   :  { %902 = vmatpush3.msra.mxu0 %v1142_v32 }
  0x1e   :  { %844 = vmatmul.mubr.msk.f32.gmra.mxu0 %vm51_vm0, %v39_v19  ;;  %903 = vmatprep.subr.mxu0 %v1149_v33 }
  0x1f   :  { %846 = vmatprep.mubr.msk.f32.mxu0 %vm51_vm0, %v40_v20  ;;  %904 = vmatpush3.msra.mxu0 %v1149_v33 }
  0x20   :  { %905 = vmatprep.subr.mxu0 %v1156_v34 }
  0x21   :  { %906 = vmatpush3.msra.mxu0 %v1156_v34 }
  0x22   :  { %847 = vmatmul.mubr.msk.f32.gmra.mxu0 %vm51_vm0, %v41_v21  ;;  %907 = vmatprep.subr.mxu0 %v1163_v35 }
  0x23   :  { %908 = vmatpush3.msra.mxu0 %v1163_v35 }
  0x24   :  { %909 = vmatprep.subr.mxu0 %v1170_v36 }
  0x25   :  { %910 = vmatpush3.msra.mxu0 %v1170_v36 }
  0x26   :  { %911 = vmatprep.subr.mxu0 %v1177_v37 }
  0x27   :  { %912 = vmatpush3.msra.mxu0 %v1177_v37 }
  0x28   :  { %913 = vmatprep.subr.mxu0 %v489_v23 }
  0x29   :  { %914 = vmatpush3.msra.mxu0 %v489_v23 }
  0x2a   :  { %915 = vmatprep.subr.mxu0 %v488_v24 }
  0x2b   :  { %916 = vmatpush3.msra.mxu0 %v488_v24 }
  0x2c   :  { %917 = vmatprep.subr.mxu0 %v487_v25 }
  0x2d   :  { %918 = vmatpush3.msra.mxu0 %v487_v25 }
  0xc6   :  { %v827_v39 = vpop.f32.mrf.mxu0 }
  0xc7   :  { %v172_v40 = vadd.f32 %v827_v39, %v1186_v38 }
  0xc8   :  { %v166_v41 = vpop.f32.mrf.mxu0 }
  0xc9   :  { %v167_v42 = vadd.f32 %v1186_v38, %v166_v41  ;;  %v246_v45 = vmax.f32 %v172_v40, 0.0 }
  0xca   :  { %v830_v43 = vpop.f32.mrf.mxu0 }
  0xcb   :  { %v245_v44 = vmax.f32 %v167_v42, 0.0  ;;  %v182_v46 = vadd.f32 %v830_v43, %v1186_v38 }
  0xcc   :  { %v176_v47 = vpop.f32.mrf.mxu0 }
  0xcd   :  { %v177_v48 = vadd.f32 %v1186_v38, %v176_v47  ;;  %865 = vmatprep.mubr.msk.f32.mxu1 %vm276_vm1, %v245_v44  ;;  %v248_v51 = vmax.f32 %v182_v46, 0.0 }
  0xce   :  { %v833_v49 = vpop.f32.mrf.mxu0  ;;  %866 = vmatmul.mubr.msk.f32.vlgmr.msra.gmra.mxu1 %vm276_vm1, %v246_v45 }
  0xcf   :  { %v247_v50 = vmax.f32 %v177_v48, 0.0  ;;  %961 = vmatpush3.msra.mxu1 %v501_v26  ;;  %v192_v52 = vadd.f32 %v833_v49, %v1186_v38  ;;  %v486_v26 = vld [vmem:[%s1264_s5] sm:$0xff] }
  0xd0   :  { %v186_v53 = vpop.f32.mrf.mxu0  ;;  %946 = vmatprep.subr.mxu1 %v500_v27  ;;  %919 = vmatprep.subr.mxu0 %v486_v26 }
  0xd1   :  { %v187_v54 = vadd.f32 %v1186_v38, %v186_v53  ;;  %868 = vmatprep.mubr.msk.f32.mxu1 %vm276_vm1, %v247_v50  ;;  %962 = vmatpush3.msra.mxu1 %v500_v27  ;;  %v250_v57 = vmax.f32 %v192_v52, 0.0  ;;  %v729_v27 = vld [vmem:[%s1263_s4] ss:$0 sm:$0xff] }
  0xd2   :  { %v836_v55 = vpop.f32.mrf.mxu0  ;;  %869 = vmatmul.mubr.msk.f32.gmra.mxu1 %vm276_vm1, %v248_v51  ;;  %947 = vmatprep.subr.mxu1 %v499_v28 }
  0xd3   :  { %v249_v56 = vmax.f32 %v187_v54, 0.0  ;;  %963 = vmatpush3.msra.mxu1 %v499_v28  ;;  %v202_v58 = vadd.f32 %v836_v55, %v1186_v38  ;;  %920 = vmatpush3.msra.mxu0 %v486_v26 }
  0xd4   :  { %v196_v59 = vpop.f32.mrf.mxu0  ;;  %948 = vmatprep.subr.mxu1 %v1123_v29 }
  0xd5   :  { %v197_v60 = vadd.f32 %v1186_v38, %v196_v59  ;;  %871 = vmatprep.mubr.msk.f32.mxu1 %vm276_vm1, %v249_v56  ;;  %964 = vmatpush3.msra.mxu1 %v1123_v29  ;;  %v252_v63 = vmax.f32 %v202_v58, 0.0 }
  0xd6   :  { %v839_v61 = vpop.f32.mrf.mxu0  ;;  %872 = vmatmul.mubr.msk.f32.gmra.mxu1 %vm276_vm1, %v250_v57  ;;  %949 = vmatprep.subr.mxu1 %v1128_v30 }
  0xd7   :  { %v251_v62 = vmax.f32 %v197_v60, 0.0  ;;  %965 = vmatpush3.msra.mxu1 %v1128_v30  ;;  %v212_v0 = vadd.f32 %v839_v61, %v1186_v38 }
  0xd8   :  { %v206_v1 = vpop.f32.mrf.mxu0  ;;  %950 = vmatprep.subr.mxu1 %v1135_v31 }
  0xd9   :  { %v207_v2 = vadd.f32 %v1186_v38, %v206_v1  ;;  %874 = vmatprep.mubr.msk.f32.mxu1 %vm276_vm1, %v251_v62  ;;  %966 = vmatpush3.msra.mxu1 %v1135_v31  ;;  %v254_v5 = vmax.f32 %v212_v0, 0.0 }
  0xda   :  { %v842_v3 = vpop.f32.mrf.mxu0  ;;  %875 = vmatmul.mubr.msk.f32.gmra.mxu1 %vm276_vm1, %v252_v63  ;;  %951 = vmatprep.subr.mxu1 %v1142_v32 }
  0xdb   :  { %v253_v4 = vmax.f32 %v207_v2, 0.0  ;;  %967 = vmatpush3.msra.mxu1 %v1142_v32  ;;  %v222_v6 = vadd.f32 %v842_v3, %v1186_v38 }
  0xdc   :  { %v216_v7 = vpop.f32.mrf.mxu0  ;;  %952 = vmatprep.subr.mxu1 %v1149_v33 }
  0xdd   :  { %v217_v8 = vadd.f32 %v1186_v38, %v216_v7  ;;  %877 = vmatprep.mubr.msk.f32.mxu1 %vm276_vm1, %v253_v4  ;;  %968 = vmatpush3.msra.mxu1 %v1149_v33  ;;  %v256_v11 = vmax.f32 %v222_v6, 0.0 }
  0xde   :  { %v845_v9 = vpop.f32.mrf.mxu0  ;;  %878 = vmatmul.mubr.msk.f32.gmra.mxu1 %vm276_vm1, %v254_v5  ;;  %953 = vmatprep.subr.mxu1 %v1156_v34 }
  0xdf   :  { %v255_v10 = vmax.f32 %v217_v8, 0.0  ;;  %969 = vmatpush3.msra.mxu1 %v1156_v34  ;;  %v232_v12 = vadd.f32 %v845_v9, %v1186_v38 }
  0xe0   :  { %v226_v13 = vpop.f32.mrf.mxu0  ;;  %954 = vmatprep.subr.mxu1 %v1163_v35 }
  0xe1   :  { %v227_v14 = vadd.f32 %v1186_v38, %v226_v13  ;;  %880 = vmatprep.mubr.msk.f32.mxu1 %vm276_vm1, %v255_v10  ;;  %970 = vmatpush3.msra.mxu1 %v1163_v35  ;;  %v258_v17 = vmax.f32 %v232_v12, 0.0  ;;  %v746_v12 = vld [vmem:[%s1265_s6] ss:$0 sm:$0xff] }
  0xe2   :  { %v848_v15 = vpop.f32.mrf.mxu0  ;;  %881 = vmatmul.mubr.msk.f32.gmra.mxu1 %vm276_vm1, %v256_v11  ;;  %955 = vmatprep.subr.mxu1 %v1170_v36 }
  0xe3   :  { %v257_v16 = vmax.f32 %v227_v14, 0.0  ;;  %971 = vmatpush3.msra.mxu1 %v1170_v36  ;;  %v242_v18 = vadd.f32 %v848_v15, %v1186_v38 }
  0xe4   :  { %v236_v19 = vpop.f32.mrf.mxu0  ;;  %956 = vmatprep.subr.mxu1 %v1177_v37 }
  0xe5   :  { %v237_v20 = vadd.f32 %v1186_v38, %v236_v19  ;;  %883 = vmatprep.mubr.msk.f32.mxu1 %vm276_vm1, %v257_v16  ;;  %972 = vmatpush3.msra.mxu1 %v1177_v37  ;;  %v260_v22 = vmax.f32 %v242_v18, 0.0 }
  0xe6   :  { %884 = vmatmul.mubr.msk.f32.gmra.mxu1 %vm276_vm1, %v258_v17  ;;  %957 = vmatprep.subr.mxu1 %v489_v23 }
  0xe7   :  { %v259_v21 = vmax.f32 %v237_v20, 0.0  ;;  %973 = vmatpush3.msra.mxu1 %v489_v23 }
  0xe8   :  { %958 = vmatprep.subr.mxu1 %v488_v24 }
  0xe9   :  { %886 = vmatprep.mubr.msk.f32.mxu1 %vm276_vm1, %v259_v21  ;;  %974 = vmatpush3.msra.mxu1 %v488_v24 }
  0xea   :  { %887 = vmatmul.mubr.msk.f32.gmra.mxu1 %vm276_vm1, %v260_v22  ;;  %959 = vmatprep.subr.mxu1 %v487_v25 }
  0xeb   :  { %975 = vmatpush3.msra.mxu1 %v487_v25 }
  0xec   :  { %960 = vmatprep.subr.mxu1 %v486_v26 }
  0xed   :  { %976 = vmatpush3.msra.mxu1 %v486_v26 }
 0x18e   :  { %v867_v28 = vpop.f32.mrf.mxu1 }
 0x18f   :  { %v397_v29 = vadd.f32 %v867_v28, %v729_v27 }
 0x190   :  { %v391_v30 = vpop.f32.mrf.mxu1 }
 0x191   :  { %v392_v31 = vadd.f32 %v729_v27, %v391_v30  ;;  %v471_v34 = vmax.f32 %v397_v29, 0.0 }
 0x192   :  { %v870_v32 = vpop.f32.mrf.mxu1 }
 0x193   :  { %v470_v33 = vmax.f32 %v392_v31, 0.0  ;;  %v407_v35 = vadd.f32 %v870_v32, %v729_v27 }
 0x194   :  { %v401_v36 = vpop.f32.mrf.mxu1 }
 0x195   :  { %v402_v37 = vadd.f32 %v729_v27, %v401_v36  ;;  %921 = vmatprep.mubr.f32.mxu0 %v470_v33  ;;  %v473_v40 = vmax.f32 %v407_v35, 0.0 }
 0x196   :  { %v873_v38 = vpop.f32.mrf.mxu1  ;;  %922 = vmatmul.mubr.f32.vlgmr.msra.gmra.mxu0 %v471_v34 }
 0x197   :  { %v472_v39 = vmax.f32 %v402_v37, 0.0  ;;  %v417_v41 = vadd.f32 %v873_v38, %v729_v27 }
 0x198   :  { %v411_v42 = vpop.f32.mrf.mxu1 }
 0x199   :  { %v412_v43 = vadd.f32 %v729_v27, %v411_v42  ;;  %924 = vmatprep.mubr.f32.mxu0 %v472_v39  ;;  %v475_v46 = vmax.f32 %v417_v41, 0.0 }
 0x19a   :  { %v876_v44 = vpop.f32.mrf.mxu1  ;;  %925 = vmatmul.mubr.f32.gmra.mxu0 %v473_v40 }
 0x19b   :  { %v474_v45 = vmax.f32 %v412_v43, 0.0  ;;  %v427_v47 = vadd.f32 %v876_v44, %v729_v27 }
 0x19c   :  { %v421_v48 = vpop.f32.mrf.mxu1 }
 0x19d   :  { %v422_v49 = vadd.f32 %v729_v27, %v421_v48  ;;  %927 = vmatprep.mubr.f32.mxu0 %v474_v45  ;;  %v477_v52 = vmax.f32 %v427_v47, 0.0 }
 0x19e   :  { %v879_v50 = vpop.f32.mrf.mxu1  ;;  %928 = vmatmul.mubr.f32.gmra.mxu0 %v475_v46 }
 0x19f   :  { %v476_v51 = vmax.f32 %v422_v49, 0.0  ;;  %v437_v53 = vadd.f32 %v879_v50, %v729_v27 }
 0x1a0   :  { %v431_v54 = vpop.f32.mrf.mxu1 }
 0x1a1   :  { %v432_v55 = vadd.f32 %v729_v27, %v431_v54  ;;  %930 = vmatprep.mubr.f32.mxu0 %v476_v51  ;;  %v479_v58 = vmax.f32 %v437_v53, 0.0 }
 0x1a2   :  { %v882_v56 = vpop.f32.mrf.mxu1  ;;  %931 = vmatmul.mubr.f32.gmra.mxu0 %v477_v52 }
 0x1a3   :  { %v478_v57 = vmax.f32 %v432_v55, 0.0  ;;  %v447_v59 = vadd.f32 %v882_v56, %v729_v27 }
 0x1a4   :  { %v441_v60 = vpop.f32.mrf.mxu1 }
 0x1a5   :  { %v442_v61 = vadd.f32 %v729_v27, %v441_v60  ;;  %933 = vmatprep.mubr.f32.mxu0 %v478_v57  ;;  %v481_v0 = vmax.f32 %v447_v59, 0.0 }
 0x1a6   :  { %v885_v62 = vpop.f32.mrf.mxu1  ;;  %934 = vmatmul.mubr.f32.gmra.mxu0 %v479_v58 }
 0x1a7   :  { %v480_v63 = vmax.f32 %v442_v61, 0.0  ;;  %v457_v1 = vadd.f32 %v885_v62, %v729_v27 }
 0x1a8   :  { %v451_v2 = vpop.f32.mrf.mxu1 }
 0x1a9   :  { %v452_v3 = vadd.f32 %v729_v27, %v451_v2  ;;  %936 = vmatprep.mubr.f32.mxu0 %v480_v63  ;;  %v483_v6 = vmax.f32 %v457_v1, 0.0 }
 0x1aa   :  { %v888_v4 = vpop.f32.mrf.mxu1  ;;  %937 = vmatmul.mubr.f32.gmra.mxu0 %v481_v0 }
 0x1ab   :  { %v482_v5 = vmax.f32 %v452_v3, 0.0  ;;  %v467_v7 = vadd.f32 %v888_v4, %v729_v27 }
 0x1ac   :  { %v461_v8 = vpop.f32.mrf.mxu1 }
 0x1ad   :  { %v462_v9 = vadd.f32 %v729_v27, %v461_v8  ;;  %939 = vmatprep.mubr.f32.mxu1 %v482_v5  ;;  %v485_v11 = vmax.f32 %v467_v7, 0.0 }
 0x1ae   :  { %940 = vmatmul.mubr.f32.vlgmr.msra.gmra.mxu1 %v483_v6 }
 0x1af   :  { %v484_v10 = vmax.f32 %v462_v9, 0.0 }
 0x1b1   :  { %942 = vmatprep.mubr.f32.mxu1 %v484_v10 }
 0x1b2   :  { %943 = vmatmul.mubr.f32.gmra.mxu1 %v485_v11 }
 0x256   :  { %v923_v13 = vpop.f32.mrf.mxu0 }
 0x258   :  { %v575_v14 = vpop.f32.mrf.mxu0 }
 0x259   :  { %v576_v15 = vadd.f32 %v746_v12, %v575_v14 }
 0x25a   :  { %v926_v16 = vpop.f32.mrf.mxu0 }
 0x25b   :  { %655 = vst.msk [vmem:[#allocation2] sm:$0xff] %vm654_vm2, %v576_v15 }
 0x25c   :  { %v585_v17 = vpop.f32.mrf.mxu0 }
 0x25e   :  { %v929_v18 = vpop.f32.mrf.mxu0 }
 0x260   :  { %v595_v19 = vpop.f32.mrf.mxu0 }
 0x262   :  { %v701_v20 = vld [vmem:[#allocation2] sm:$0xff]  ;;  %v932_v21 = vpop.f32.mrf.mxu0 }
 0x263   :  { %702 = vst [vmem:[%s1266_s7] sm:$0xff] %v701_v20 }
 0x264   :  { %v605_v22 = vpop.f32.mrf.mxu0 }
 0x266   :  { %v935_v23 = vpop.f32.mrf.mxu0 }
 0x268   :  { %v615_v24 = vpop.f32.mrf.mxu0 }
 0x26a   :  { %v938_v25 = vpop.f32.mrf.mxu0 }
 0x26c   :  { %v625_v26 = vpop.f32.mrf.mxu0 }
 0x26e   :  { %v941_v27 = vpop.f32.mrf.mxu1 }
 0x270   :  { %v635_v28 = vpop.f32.mrf.mxu1 }
 0x272   :  { %v944_v29 = vpop.f32.mrf.mxu1 }
 0x274   :  { %v645_v30 = vpop.f32.mrf.mxu1 }

</bundles_post_ra>
